<compile_context>
chip_gen: v7x
topology: tpu7x:2x2x1
jax: 0.10.0
libtpu: 0.0.40
codegen_flags: <defaults>
</compile_context>

<pallas_src>
import functools

import jax
import jax.numpy as jnp
import numpy as np
from jax.experimental import pallas as pl
from jax.experimental.pallas import tpu as pltpu


def _round_up(x: int, m: int) -> int:
    return (x + m - 1) // m * m


def _vmem_capacity_bytes(default=64 * 1024 * 1024) -> int:
    """Physical VMEM per TensorCore; conservative default (v7x) if unknown."""
    try:
        info = pltpu.get_tpu_info()
        cap = getattr(info, "vmem_capacity_bytes", None)
        if cap:
            return int(cap)
    except Exception:
        pass
    return default


def mlp_kernel(x_ref, w1_ref, b1_ref, w2_ref, out_ref, hid_ref, *, bf16_matmul):
    # x_ref:   (TB, dim_in)       VMEM  (batch tile, unpadded feature dim)
    # w1_ref:  (dim_in, H_pad)    VMEM  (transposed hidden.weight, resident)
    # b1_ref:  (1, H_pad)         VMEM  (hidden.bias, resident)
    # w2_ref:  (H_pad, D_pad)     VMEM  (transposed output.weight, resident)
    # out_ref: (TB, D_pad)
    # hid_ref: (TB, H_pad)
    x = x_ref[...]
    w1 = w1_ref[...]
    w2 = w2_ref[...]
    if bf16_matmul:
        # MXU-native operands; accumulation stays f32 below.
        x = x.astype(jnp.bfloat16)
        w1 = w1.astype(jnp.bfloat16)
        w2 = w2.astype(jnp.bfloat16)

    # hidden = ReLU(x @ W1 + b1) -- f32 accumulation on the MXU, f32 epilogue
    # on the VPU (v5e friendly: no bf16 elementwise needed).
    h = jnp.dot(x, w1, preferred_element_type=jnp.float32)
    h = jnp.maximum(h + b1_ref[...].astype(jnp.float32), 0.0)
    hid_ref[...] = h.astype(hid_ref.dtype)

    # out = hidden @ W2 -- f32 accumulation; cast only at the lane-dense store.
    out = jnp.dot(h.astype(w2.dtype), w2, preferred_element_type=jnp.float32)
    out_ref[...] = out.astype(out_ref.dtype)


def prepare_params(w1_t, b1, w2_t):
    """Pad weight lane dims to multiples of 128 ONCE (outside the forward).

    w1_t: (dim_in, n_hid), b1: (1, n_hid), w2_t: (n_hid, dim_out).
    Zero padding keeps the math exact: padded hidden columns are ReLU(0)=0 and
    the matching rows of W2 are 0."""
    dim_in, n_hid = w1_t.shape
    dim_out = w2_t.shape[1]
    h_pad = _round_up(n_hid, 128)
    d_pad = _round_up(dim_out, 128)
    if h_pad != n_hid:
        w1_t = jnp.pad(w1_t, ((0, 0), (0, h_pad - n_hid)))
        b1 = jnp.pad(b1, ((0, 0), (0, h_pad - n_hid)))
    if h_pad != n_hid or d_pad != dim_out:
        w2_t = jnp.pad(w2_t, ((0, h_pad - n_hid), (0, d_pad - dim_out)))
    return w1_t, b1, w2_t


@functools.partial(
    jax.jit, static_argnames=("n_hid", "dim_out", "block_b", "bf16_matmul"))
def net_forward(x, w1p, b1p, w2p, *, n_hid, dim_out, block_b=1024,
                bf16_matmul=False):
    """Forward pass of Net.

    x: (B, dim_in); pre-padded weights from `prepare_params`:
    w1p: (dim_in, H_pad), b1p: (1, H_pad), w2p: (H_pad, D_pad).
    Returns (out, hidden) with the original (unpadded) feature widths."""
    B, dim_in = x.shape
    h_pad = w1p.shape[1]
    d_pad = w2p.shape[1]
    dtype = x.dtype
    itemsize = jnp.dtype(dtype).itemsize

    # ---- batch-tile sizing from the real VMEM budget ---------------------
    row_mult = 16 if dtype == jnp.bfloat16 else 8        # sublane packing
    vmem_cap = _vmem_capacity_bytes()
    budget = int(vmem_cap * 0.75)                        # leave headroom

    # Resident weights are single-buffered (pl.Buffered(1) below).
    weight_bytes = (dim_in * h_pad + h_pad + h_pad * d_pad) * itemsize
    # Per batch-row: double-buffered x / out / hidden tiles + f32 temporaries.
    per_row = ((2 * dim_in + 2 * d_pad + 2 * h_pad) * itemsize
               + (h_pad + d_pad) * 4)
    tb_cap = max(row_mult,
                 ((budget - weight_bytes) // per_row) // row_mult * row_mult)
    tb = min(block_b, tb_cap, _round_up(B, row_mult))
    tb = max(row_mult, tb // row_mult * row_mult)
    # Give the second TensorCore (v7x megacore) something to do when the batch
    # allows >= 2 grid steps; costs only ~0.35 us of step overhead elsewhere.
    if pl.cdiv(B, tb) == 1 and B >= 2 * row_mult:
        tb = max(row_mult, _round_up(pl.cdiv(B, 2), row_mult))
    grid = (pl.cdiv(B, tb),)     # ragged last block handled by Pallas masking

    # TODO(synk): if the resident weights alone blow the VMEM budget (tb_cap
    # pinned at row_mult for huge n_hid), add a second "arbitrary" grid axis
    # over H_pad with an f32 `out` accumulator instead of shrinking tb further.

    vmem_need = weight_bytes + tb * per_row
    vmem_limit = int(min(vmem_cap,
                         max(int(vmem_need * 1.25) + (1 << 20),
                             32 * 1024 * 1024)))

    out_shapes = (
        jax.ShapeDtypeStruct((B, d_pad), dtype),    # out   (lane-padded iff needed)
        jax.ShapeDtypeStruct((B, h_pad), dtype),    # hidden
    )

    cost = pl.CostEstimate(
        flops=2 * B * (dim_in * h_pad + h_pad * d_pad),
        transcendentals=0,
        bytes_accessed=itemsize * (
            B * dim_in                 # x
            + dim_in * h_pad + h_pad   # W1, b1
            + h_pad * d_pad            # W2
            + B * d_pad                # out
            + B * h_pad),              # hidden
    )

    kernel = functools.partial(mlp_kernel, bf16_matmul=bf16_matmul)

    out_p, hid_p = pl.pallas_call(
        kernel,
        out_shape=out_shapes,
        grid=grid,
        in_specs=[
            # x tile follows the batch grid; feature dim kept at full extent
            # (no wrapper-side pad/copy of x).
            pl.BlockSpec((tb, dim_in), lambda i: (i, 0)),
            # Resident weights / bias: constant index_map + single buffer
            # (one DMA total, half the VMEM of the default double buffer).
            pl.BlockSpec((dim_in, h_pad), lambda i: (0, 0),
                         pipeline_mode=pl.Buffered(1)),
            pl.BlockSpec((1, h_pad), lambda i: (0, 0),
                         pipeline_mode=pl.Buffered(1)),
            pl.BlockSpec((h_pad, d_pad), lambda i: (0, 0),
                         pipeline_mode=pl.Buffered(1)),
        ],
        out_specs=[
            pl.BlockSpec((tb, d_pad), lambda i: (i, 0)),
            pl.BlockSpec((tb, h_pad), lambda i: (i, 0)),
        ],
        compiler_params=pltpu.CompilerParams(
            dimension_semantics=("parallel",),       # both TCs on v7x
            vmem_limit_bytes=vmem_limit,
        ),
        cost_estimate=cost,
    )(x, w1p, b1p, w2p)

    # Only slice when the logical feature dims were not 128-multiples.
    out = out_p if d_pad == dim_out else out_p[:, :dim_out]
    hidden = hid_p if h_pad == n_hid else hid_p[:, :n_hid]
    return out, hidden


def init_params(key, dim_in, n_hid, dim_out, regime="rich", dtype=jnp.float32):
    """Deterministic init mirroring the PyTorch module's __init__."""
    k1, k2, k3 = jax.random.split(key, 3)
    std_in = np.sqrt(2.0 / dim_in)
    # hidden.weight: (n_hid, dim_in) in torch; store transposed (dim_in, n_hid)
    w1_t = (jax.random.normal(k1, (dim_in, n_hid)) * std_in).astype(dtype)
    b1 = (jax.random.normal(k2, (1, n_hid)) * std_in).astype(dtype)
    if regime == "rich":
        std_out = np.sqrt(2.0 / n_hid)
    elif regime == "lazy":
        std_out = 2.0 / n_hid
    else:
        raise ValueError(regime)
    # output.weight: (dim_out, n_hid) in torch; store transposed (n_hid, dim_out)
    w2_t = (jax.random.normal(k3, (n_hid, dim_out)) * std_out).astype(dtype)
    return w1_t, b1, w2_t


if __name__ == "__main__":
    key = jax.random.PRNGKey(0)
    k_x, k_p = jax.random.split(key)

    B, dim_in, n_hid, dim_out = 8, 16, 32, 4
    x = jax.random.normal(k_x, (B, dim_in), dtype=jnp.float32)
    w1_t, b1, w2_t = init_params(k_p, dim_in, n_hid, dim_out, regime="rich")

    # Pad weights once (outside the forward / training loop).
    w1p, b1p, w2p = prepare_params(w1_t, b1, w2_t)

    out, hidden = net_forward(x, w1p, b1p, w2p, n_hid=n_hid, dim_out=dim_out)
    jax.block_until_ready((out, hidden))

    # Pure-JAX reference check (zero-padding of the weights keeps math exact).
    h_ref = jnp.maximum(x @ w1_t + b1, 0.0)
    o_ref = h_ref @ w2_t
    assert out.shape == (B, dim_out) and hidden.shape == (B, n_hid)
    assert jnp.allclose(hidden, h_ref, atol=1e-5, rtol=1e-5)
    assert jnp.allclose(out, o_ref, atol=1e-5, rtol=1e-5)

    print("KERNEL_OK")
</pallas_src>

<mosaic_0001>
module attributes {stable_mosaic.version = 11 : i64} {
  func.func @mlp_kernel(%arg0: i32, %arg1: memref<8x16xf32, #tpu.memory_space<vmem>>, %arg2: memref<16x128xf32, #tpu.memory_space<vmem>>, %arg3: memref<1x128xf32, #tpu.memory_space<vmem>>, %arg4: memref<128x128xf32, #tpu.memory_space<vmem>>, %arg5: memref<8x128xf32, #tpu.memory_space<vmem>>, %arg6: memref<8x128xf32, #tpu.memory_space<vmem>>) attributes {dimension_semantics = [#tpu.dimension_semantics<parallel>], iteration_bounds = array<i64: 1>, scalar_prefetch = 0 : i64, scratch_operands = 0 : i64, tpu.core_type = #tpu.core_type<tc>, window_params = [{transform_indices = @transform_0, window_bounds = array<i64: 8, 16>}, {pipeline_mode = #tpu.pipeline_mode<synchronous>, transform_indices = @transform_1, window_bounds = array<i64: 16, 128>}, {pipeline_mode = #tpu.pipeline_mode<synchronous>, transform_indices = @transform_2, window_bounds = array<i64: 1, 128>}, {pipeline_mode = #tpu.pipeline_mode<synchronous>, transform_indices = @transform_3, window_bounds = array<i64: 128, 128>}, {transform_indices = @transform_4, window_bounds = array<i64: 8, 128>}, {transform_indices = @transform_5, window_bounds = array<i64: 8, 128>}]} {
    %c0 = arith.constant 0 : index
    %c0_0 = arith.constant 0 : index
    %0 = vector.load %arg1[%c0, %c0_0] : memref<8x16xf32, #tpu.memory_space<vmem>>, vector<8x16xf32>
    %c0_1 = arith.constant 0 : index
    %c0_2 = arith.constant 0 : index
    %1 = vector.load %arg2[%c0_1, %c0_2] : memref<16x128xf32, #tpu.memory_space<vmem>>, vector<16x128xf32>
    %c0_3 = arith.constant 0 : index
    %c0_4 = arith.constant 0 : index
    %2 = vector.load %arg4[%c0_3, %c0_4] : memref<128x128xf32, #tpu.memory_space<vmem>>, vector<128x128xf32>
    %cst = arith.constant dense<0.000000e+00> : vector<8x128xf32>
    %3 = tpu.matmul %0, %1, %cst {dimension_numbers = #tpu.dot_dimension_numbers<[1], [0], [0], [1], [0, 0, 1, 1], [], []>} : vector<8x16xf32>, vector<16x128xf32>, vector<8x128xf32> -> vector<8x128xf32>
    %c0_5 = arith.constant 0 : index
    %c0_6 = arith.constant 0 : index
    %4 = vector.load %arg3[%c0_5, %c0_6] : memref<1x128xf32, #tpu.memory_space<vmem>>, vector<1x128xf32>
    %5 = vector.broadcast %4 : vector<1x128xf32> to vector<8x128xf32>
    %6 = arith.addf %3, %5 : vector<8x128xf32>
    %cst_7 = arith.constant 0.000000e+00 : f32
    %7 = vector.broadcast %cst_7 : f32 to vector<8x128xf32>
    %8 = arith.maximumf %6, %7 : vector<8x128xf32>
    %c0_8 = arith.constant 0 : index
    %c0_9 = arith.constant 0 : index
    %9 = vector.load %arg6[%c0_8, %c0_9] : memref<8x128xf32, #tpu.memory_space<vmem>>, vector<8x128xf32>
    tpu.vector_store %arg6[%c0_8, %c0_9], %8 {strides = array<i32>} : memref<8x128xf32, #tpu.memory_space<vmem>>, vector<8x128xf32>,
    %cst_10 = arith.constant dense<0.000000e+00> : vector<8x128xf32>
    %10 = tpu.matmul %8, %2, %cst_10 {dimension_numbers = #tpu.dot_dimension_numbers<[1], [0], [0], [1], [0, 0, 1, 1], [], []>} : vector<8x128xf32>, vector<128x128xf32>, vector<8x128xf32> -> vector<8x128xf32>
    %c0_11 = arith.constant 0 : index
    %c0_12 = arith.constant 0 : index
    %11 = vector.load %arg5[%c0_11, %c0_12] : memref<8x128xf32, #tpu.memory_space<vmem>>, vector<8x128xf32>
    tpu.vector_store %arg5[%c0_11, %c0_12], %10 {strides = array<i32>} : memref<8x128xf32, #tpu.memory_space<vmem>>, vector<8x128xf32>,
    return
  }
  func.func @transform_0(%arg0: i32) -> (i32, i32) {
    %c0_i32 = arith.constant 0 : i32
    %c0_i32_0 = arith.constant 0 : i32
    return %arg0, %c0_i32 : i32, i32
  }
  func.func @transform_1(%arg0: i32) -> (i32, i32) {
    %c0_i32 = arith.constant 0 : i32
    %c0_i32_0 = arith.constant 0 : i32
    %c0_i32_1 = arith.constant 0 : i32
    return %c0_i32, %c0_i32_0 : i32, i32
  }
  func.func @transform_2(%arg0: i32) -> (i32, i32) {
    %c0_i32 = arith.constant 0 : i32
    %c0_i32_0 = arith.constant 0 : i32
    %c0_i32_1 = arith.constant 0 : i32
    return %c0_i32, %c0_i32_0 : i32, i32
  }
  func.func @transform_3(%arg0: i32) -> (i32, i32) {
    %c0_i32 = arith.constant 0 : i32
    %c0_i32_0 = arith.constant 0 : i32
    %c0_i32_1 = arith.constant 0 : i32
    return %c0_i32, %c0_i32_0 : i32, i32
  }
  func.func @transform_4(%arg0: i32) -> (i32, i32) {
    %c0_i32 = arith.constant 0 : i32
    %c0_i32_0 = arith.constant 0 : i32
    return %arg0, %c0_i32 : i32, i32
  }
  func.func @transform_5(%arg0: i32) -> (i32, i32) {
    %c0_i32 = arith.constant 0 : i32
    %c0_i32_0 = arith.constant 0 : i32
    return %arg0, %c0_i32 : i32, i32
  }
}

</mosaic_0001>

<bundles_post_ra>
// kernel: net_forward.1
= control target key start
LH: loop header
LB: loop body
LE: loop exit
PB: predicated region body
PF: predicated region fallthrough
CT: control target
= control target key end

     0   :  { %11 = vsyncpa [#allocation3], 0  ;;  %s545_s0 = inlined_call_operand.hbm [shape: f32[8,16], index: 0, kind: input, shape index: {}]   ;;  %s546_s1 = inlined_call_operand.hbm [shape: f32[16,128], index: 1, kind: input, shape index: {}]   ;;  %s547_s2 = inlined_call_operand.vmem [shape: f32[1,128], index: 2, kind: input, shape index: {}]   ;;  %s548_s3 = inlined_call_operand.hbm [shape: f32[128,128], index: 3, kind: input, shape index: {}]   ;;  %s549_s4 = inlined_call_operand.vmem [shape: f32[8,128], index: 4, kind: output, shape index: {0}]   ;;  %s550_s5 = inlined_call_operand.hbm [shape: f32[8,128], index: 5, kind: output, shape index: {1}]  }
   0x1   :  { %12 = vsyncpa [#allocation6], 0 }
   0x2   :  { %13 = vsyncpa [#allocation4], 0  ;;  %s446_s18 = smov [#allocation5]   ;;  %s352_s22 = scalar_lea.hbm %s546_s1, 256 }
   0x3   :  { %s29_s19 = sshll.u32 %s446_s18, 4  ;;  %p353_p0 = scmp.ne.s32.totalorder %s546_s1, %s352_s22  ;;  %s30_s19 = int_to_ptr.vmem [resolvable:$true] %s29_s19 }
   0x4   :  { %p356_p1 = scmp.lt.u32.totalorder %s352_s22, %s546_s1 }
   0x6   :  { %p358_p2 = pnand %p356_p1, %p353_p0 }
   0x8   :  { %361 = shalt.err (!%p358_p2)
}
   0x9   :  { %s362_s27 = scalar_lea.vmem %s30_s19, 256  ;;  %p367_p4 = scmp.lt.s32.totalorder %s30_s19, %s30_s19 }
   0xa   :  { %p363_p3 = scmp.ne.s32.totalorder %s30_s19, %s362_s27  ;;  %p368_p5 = scmp.lt.s32.totalorder %s362_s27, %s362_s27 }
   0xc   :  { %p369_p6 = por %p368_p5, %p367_p4 }
   0xe   :  { %p370_p7 = pnand %p369_p6, %p363_p3 }
  0x10   :  { %373 = shalt.err (!%p370_p7)
}
  0x11   :  { %s447_s28 = smov 128   ;;  %s448_s29 = smov 8  }
  0x12   :  { %35 = dma.hbm_to_vmem [thread:$0]  %s546_s1, 256, %s30_s19, [#allocation6], %s447_s28, %s447_s28, %s448_s29  }
  0x13   :  { %s449_s7 = smov [#allocation2]   ;;  %s450_s9 = smov [#allocation7]  }
  0x14   :  { %s20_s8 = sshll.u32 %s449_s7, 4  ;;  %s43_s10 = sshll.u32 %s450_s9, 4  ;;  %s21_s8 = int_to_ptr.vmem [resolvable:$true] %s20_s8  ;;  %s44_s10 = int_to_ptr.vmem [resolvable:$true] %s43_s10 }
  0x15   :  { %s374_s13 = scalar_lea.hbm %s545_s0, 128 }
  0x16   :  { %p375_p8 = scmp.ne.s32.totalorder %s545_s0, %s374_s13  ;;  %p378_p9 = scmp.lt.u32.totalorder %s374_s13, %s545_s0 }
  0x18   :  { %p380_p10 = pnand %p378_p9, %p375_p8 }
  0x1a   :  { %383 = shalt.err (!%p380_p10)
}
  0x1b   :  { %s384_s1 = scalar_lea.vmem %s21_s8, 128  ;;  %p389_p12 = scmp.lt.s32.totalorder %s21_s8, %s21_s8 }
  0x1c   :  { %p385_p11 = scmp.ne.s32.totalorder %s21_s8, %s384_s1  ;;  %p390_p13 = scmp.lt.s32.totalorder %s384_s1, %s384_s1 }
  0x1e   :  { %p391_p0 = por %p390_p13, %p389_p12 }
  0x20   :  { %p392_p1 = pnand %p391_p0, %p385_p11 }
  0x22   :  { %395 = shalt.err (!%p392_p1)
}
  0x23   :  { %23 = dma.hbm_to_vmem [thread:$0]  %s545_s0, 128, %s21_s8, [#allocation3]  }
  0x24   :  { %s396_s22 = scalar_lea.hbm %s548_s3, 2048 }
  0x25   :  { %p397_p2 = scmp.ne.s32.totalorder %s548_s3, %s396_s22  ;;  %p400_p3 = scmp.lt.u32.totalorder %s396_s22, %s548_s3 }
  0x27   :  { %p402_p4 = pnand %p400_p3, %p397_p2 }
  0x29   :  { %405 = shalt.err (!%p402_p4)
}
  0x2a   :  { %s406_s27 = scalar_lea.vmem %s44_s10, 2048  ;;  %p411_p6 = scmp.lt.s32.totalorder %s44_s10, %s44_s10 }
  0x2b   :  { %p407_p5 = scmp.ne.s32.totalorder %s44_s10, %s406_s27  ;;  %p412_p7 = scmp.lt.s32.totalorder %s406_s27, %s406_s27 }
  0x2d   :  { %p413_p8 = por %p412_p7, %p411_p6 }
  0x2f   :  { %p414_p9 = pnand %p413_p8, %p407_p5 }
  0x31   :  { %417 = shalt.err (!%p414_p9)
}
  0x32   :  { %49 = dma.hbm_to_vmem [thread:$0]  %s548_s3, 2048, %s44_s10, [#allocation6], %s447_s28, %s447_s28, %s448_s29  }
  0x33   :  { %440 = dma.done.wait [#allocation3], 128  }
  0x34   :  { %441 = vsyncadd [#allocation3], 4294967168 }
  0x35   :  { %442 = dma.done.wait [#allocation6], 2304  }
  0x36   :  { %443 = vsyncadd [#allocation6], 4294964992  ;;  %v451_v0 = vmov 0.0|0.0   ;;  %vm452_vm0 = vmmov 0   ;;  %v453_v1 = vmov 0.0   ;;  %v60_v2 = vld [vmem:[#allocation5] sm:$0xff] }
  0x37   :  { %316 = vmatprep.subr.bf16.mxu0 %v451_v0  ;;  %278 = vmatprep.mubr.msk.f32.mxu0 %vm452_vm0, %v453_v1  ;;  %v61_v3 = vld [vmem:[#allocation5 + $0x8] sm:$0xff]  ;;  %v62_v5 = vld [vmem:[#allocation7] sm:$0xff]  ;;  %v63_v6 = vld [vmem:[#allocation7 + $0x8] sm:$0xff]  ;;  %vm85_vm1 = vcmask 130048   ;;  %s454_s29 = smov [#allocation8]  }
  0x38   :  { %319 = vmatprep.subr.bf16.mxu1 %v451_v0  ;;  %313 = vmatprep.mubr.msk.f32.mxu1 %vm452_vm0, %v453_v1  ;;  %v317_v4 = vpack.c.bf16 %v61_v3, %v60_v2  ;;  %v64_v7 = vld [vmem:[#allocation7 + $0x10] sm:$0xff]  ;;  %v320_v8 = vpack.c.bf16 %v63_v6, %v62_v5  ;;  %v65_v9 = vld [vmem:[#allocation7 + $0x18] sm:$0xff]  ;;  %v59_v10 = vld [vmem:[#allocation2] sm:$0xff]  ;;  %s240_s6 = sshll.u32 %s454_s29, 4  ;;  %s241_s6 = int_to_ptr.vmem [resolvable:$true] %s240_s6 }
  0x39   :  { %v323_v11 = vpack.c.bf16 %v65_v9, %v64_v7  ;;  %v66_v12 = vld [vmem:[#allocation7 + $0x20] sm:$0xff]  ;;  %v67_v13 = vld [vmem:[#allocation7 + $0x28] sm:$0xff]  ;;  %v68_v15 = vld [vmem:[#allocation7 + $0x30] sm:$0xff]  ;;  %s418_s7 = scalar_lea.vmem %s241_s6, 128  ;;  %p423_p11 = scmp.lt.s32.totalorder %s241_s6, %s241_s6 }
  0x3a   :  { %318 = vmatpush3.bf16.msra.mxu0 %v317_v4  ;;  %321 = vmatpush3.bf16.msra.mxu1 %v320_v8  ;;  %v326_v14 = vpack.c.bf16 %v67_v13, %v66_v12  ;;  %v69_v16 = vld [vmem:[#allocation7 + $0x38] sm:$0xff]  ;;  %v70_v18 = vld [vmem:[#allocation7 + $0x40] sm:$0xff]  ;;  %v71_v19 = vld [vmem:[#allocation7 + $0x48] sm:$0xff]  ;;  %p419_p10 = scmp.ne.s32.totalorder %s241_s6, %s418_s7  ;;  %p424_p12 = scmp.lt.s32.totalorder %s418_s7, %s418_s7 }
  0x3b   :  { %322 = vmatprep.subr.bf16.mxu1 %v451_v0  ;;  %v329_v17 = vpack.c.bf16 %v69_v16, %v68_v15  ;;  %v332_v20 = vpack.c.bf16 %v71_v19, %v70_v18  ;;  %v72_v21 = vld [vmem:[#allocation7 + $0x50] sm:$0xff]  ;;  %v73_v22 = vld [vmem:[#allocation7 + $0x58] sm:$0xff]  ;;  %v74_v24 = vld [vmem:[#allocation7 + $0x60] sm:$0xff] }
  0x3c   :  { %v335_v23 = vpack.c.bf16 %v73_v22, %v72_v21  ;;  %v75_v25 = vld [vmem:[#allocation7 + $0x68] sm:$0xff]  ;;  %v76_v27 = vld [vmem:[#allocation7 + $0x70] sm:$0xff]  ;;  %v77_v28 = vld [vmem:[#allocation7 + $0x78] sm:$0xff]  ;;  %p425_p13 = por %p424_p12, %p423_p11 }
  0x3d   :  { %279 = vmatmul.mubr.msk.f32.vlgmr.msra.gmra.mrb[0].mxu0 %vm85_vm1, %v59_v10  ;;  %v338_v26 = vpack.c.bf16 %v75_v25, %v74_v24  ;;  %v341_v29 = vpack.c.bf16 %v77_v28, %v76_v27  ;;  %v252_v30 = vld [vmem:[%s547_s2] ss:$0 sm:$0xff] }
  0x3e   :  { %324 = vmatpush3.bf16.msra.mxu1 %v323_v11  ;;  %p426_p0 = pnand %p425_p13, %p419_p10 }
  0x3f   :  { %325 = vmatprep.subr.bf16.mxu1 %v451_v0 }
  0x42   :  { %327 = vmatpush3.bf16.msra.mxu1 %v326_v14 }
  0x43   :  { %328 = vmatprep.subr.bf16.mxu1 %v451_v0 }
  0x46   :  { %330 = vmatpush3.bf16.msra.mxu1 %v329_v17 }
  0x47   :  { %331 = vmatprep.subr.bf16.mxu1 %v451_v0 }
  0x4a   :  { %333 = vmatpush3.bf16.msra.mxu1 %v332_v20 }
  0x4b   :  { %334 = vmatprep.subr.bf16.mxu1 %v451_v0 }
  0x4e   :  { %336 = vmatpush3.bf16.msra.mxu1 %v335_v23 }
  0x4f   :  { %337 = vmatprep.subr.bf16.mxu1 %v451_v0 }
  0x52   :  { %339 = vmatpush3.bf16.msra.mxu1 %v338_v26 }
  0x53   :  { %340 = vmatprep.subr.bf16.mxu1 %v451_v0 }
  0x56   :  { %342 = vmatpush3.bf16.msra.mxu1 %v341_v29 }
 0x110   :  { %v155_v31 = vpop.f32.mrb[0].mxu0 }
 0x111   :  { %v156_v32 = vadd.f32 %v252_v30, %v155_v31  ;;  %v280_v33 = vpop.f32.mrb[1].mxu0 }
 0x113   :  { %v159_v34 = vmax.f32 %v156_v32, 0.0 }
 0x115   :  { %160 = vst [vmem:[#allocation8] sm:$0xff] %v159_v34  ;;  %314 = vmatmul.mubr.f32.vlgmr.msra.gmra.mrb[0].mxu1 %v159_v34 }
 0x116   :  { %429 = shalt.err (!%p426_p0)
}
 0x117   :  { %s430_s2 = scalar_lea.hbm %s550_s5, 128 }
 0x118   :  { %p431_p1 = scmp.ne.s32.totalorder %s550_s5, %s430_s2  ;;  %p434_p2 = scmp.lt.u32.totalorder %s430_s2, %s550_s5 }
 0x11a   :  { %p436_p3 = pnand %p434_p2, %p431_p1 }
 0x11c   :  { %439 = shalt.err (!%p436_p3)
}
 0x11d   :  { %243 = dma.vmem_to_hbm [thread:$0]  %s241_s6, 128, %s550_s5, [#allocation4]  }
 0x1e8   :  { %v227_v35 = vpop.f32.mrb[0].mxu1 }
 0x1e9   :  { %231 = vst [vmem:[%s549_s4] sm:$0xff] %v227_v35  ;;  %v315_v36 = vpop.f32.mrb[1].mxu1 }
 0x1ea   :  { %444 = dma.done.wait [#allocation4], 128  }
 0x1eb   :  { %445 = vsyncadd [#allocation4], 4294967168 }
 0x1ec   :  { %249 = vsyncpa [#allocation3], 1 }
 0x1ed   :  { %250 = vsyncpa [#allocation6], 1 }
 0x1ee   :  { %251 = vsyncpa [#allocation4], 1 }

</bundles_post_ra>
